<compile_context>
chip_gen: v7x
topology: tpu7x:2x2x1
jax: 0.10.0
libtpu: 0.0.40
codegen_flags: <defaults>
</compile_context>

<pallas_src>
import jax
import jax.numpy as jnp
from jax.experimental import pallas as pl
from jax.experimental.pallas import tpu as pltpu


def _round_up(x, m):
    return ((x + m - 1) // m) * m


def _softplus(v):
    # torch.nn.Softplus(beta=1, threshold=20): linear above the threshold.
    # The overflowed exp branch is discarded by the select (forward-only).
    return jnp.where(v > 20.0, v, jnp.log1p(jnp.exp(v)))


def _make_kernel(n_inputs, input_dims, n_hidden, mu_pad):
    """Build the kernel body for a given (static) module topology."""
    use_scratch = n_inputs > 1

    def kernel(*refs):
        it = iter(refs)
        x_refs = [next(it) for _ in range(n_inputs)]
        w1_ref = next(it)
        b1_ref = next(it)
        hw_refs, hb_refs = [], []
        for _ in range(n_hidden - 1):
            hw_refs.append(next(it))
            hb_refs.append(next(it))
        wh_ref = next(it)        # fused, lane-padded [Wmu | Wsg]
        bh_ref = next(it)        # fused, lane-padded [bmu | bsg]
        out_ref = next(it)       # (tile_b, P) lane-dense output block
        xcat_ref = next(it) if use_scratch else None

        cdt = w1_ref.dtype       # MXU compute dtype (bf16 default, f32 opt.)

        # ---- layer 1: fold torch.cat into a VMEM scratch -> ONE matmul ----
        if use_scratch:
            off = 0
            for xr, d in zip(x_refs, input_dims):
                xcat_ref[:, off:off + d] = xr[...].astype(cdt)
                off += d
            x0 = xcat_ref[...]
        else:
            x0 = x_refs[0][...].astype(cdt)
        h = jnp.dot(x0, w1_ref[...], preferred_element_type=jnp.float32)
        h = _softplus(h + b1_ref[...].astype(jnp.float32))

        # ---- remaining hidden layers ----
        for wr, br in zip(hw_refs, hb_refs):
            h = _softplus(jnp.dot(h.astype(cdt), wr[...],
                                  preferred_element_type=jnp.float32)
                          + br[...].astype(jnp.float32))

        # ---- fused (mu | sigma) head: one matmul, two 128-aligned segments --
        head = (jnp.dot(h.astype(cdt), wh_ref[...],
                        preferred_element_type=jnp.float32)
                + bh_ref[...].astype(jnp.float32))
        out_ref[:, :mu_pad] = head[:, :mu_pad].astype(out_ref.dtype)
        out_ref[:, mu_pad:] = (_softplus(head[:, mu_pad:]) + 0.001
                               ).astype(out_ref.dtype)

    return kernel


def _default_tile_b(batch):
    if batch <= 256:
        return _round_up(batch, 8)
    # Keep >= 2 grid steps so v7x's two TensorCores both get work, but keep
    # tiles 128-aligned (v5e MXU rows / lane width) and <= 512.
    return max(128, min(512, _round_up(pl.cdiv(batch, 2), 128)))


def diag_gaussian_sigma_forward(inputs, params, latent_dim, *,
                                tile_b=None, compute_dtype=jnp.bfloat16):
    """inputs: list of (B, D_i) arrays (NOT concatenated); params: dict."""
    n_in = len(inputs)
    B = int(inputs[0].shape[0])
    input_dims = [int(x.shape[1]) for x in inputs]
    sum_d = sum(input_dims)
    result_dtype = inputs[0].dtype

    # Number of hidden layers present in params (w1, w2, ...).
    n_hidden = 0
    while f"w{n_hidden + 1}" in params:
        n_hidden += 1
    assert n_hidden >= 1  # TODO(synk): hidden_dims == [] variant not implemented.

    # ---- fused mu|sigma head: two separately 128-lane-aligned segments ----
    mu_pad = _round_up(latent_dim, 128)
    sg_pad = _round_up(latent_dim, 128)
    P = mu_pad + sg_pad
    wmu_p = jnp.pad(params["wmu"].astype(compute_dtype),
                    ((0, 0), (0, mu_pad - latent_dim)))
    wsg_p = jnp.pad(params["wsg"].astype(compute_dtype),
                    ((0, 0), (0, sg_pad - latent_dim)))
    whead = jnp.concatenate([wmu_p, wsg_p], axis=1)
    bmu_p = jnp.pad(params["bmu"].astype(jnp.float32),
                    ((0, 0), (0, mu_pad - latent_dim)))
    bsg_p = jnp.pad(params["bsg"].astype(jnp.float32),
                    ((0, 0), (0, sg_pad - latent_dim)))
    bhead = jnp.concatenate([bmu_p, bsg_p], axis=1)

    # ---- VMEM-resident operands (constant index_map, DMA'd once) ----
    resident_ops = [params["w1"].astype(compute_dtype),
                    params["b1"].astype(jnp.float32)]
    for i in range(2, n_hidden + 1):
        resident_ops.append(params[f"w{i}"].astype(compute_dtype))
        resident_ops.append(params[f"b{i}"].astype(jnp.float32))
    resident_ops += [whead, bhead]

    # ---- batch tiling (no wrapper-side padding; Pallas masks ragged tile) --
    if tile_b is None:
        tile_b = _default_tile_b(B)
    tile_b = max(8, _round_up(int(tile_b), 8))

    out_dtype = compute_dtype

    def vmem_bytes(tb):
        # Streamed x/out blocks and resident weights are double-buffered by
        # the BlockSpec pipeline; the concat scratch is single-buffered.
        stream = sum(tb * d * x.dtype.itemsize
                     for d, x in zip(input_dims, inputs))
        stream += tb * P * jnp.dtype(out_dtype).itemsize
        resident = sum(int(op.size) * op.dtype.itemsize for op in resident_ops)
        scratch = tb * sum_d * jnp.dtype(compute_dtype).itemsize if n_in > 1 else 0
        return 2 * (stream + resident) + scratch

    vmem_cap = 40 * 1024 * 1024   # conservative; fits v7x (64 MiB) and v5e
    while tile_b > 128 and vmem_bytes(tile_b) > vmem_cap:
        tile_b = max(128, _round_up(tile_b // 2, 128))
    vmem_limit = int(min(max(2 * vmem_bytes(tile_b), 32 * 1024 * 1024),
                         48 * 1024 * 1024))

    grid = (pl.cdiv(B, tile_b),)

    def batch_spec(d):
        return pl.BlockSpec((tile_b, d), lambda i: (i, 0))

    def resident_spec(shape):
        return pl.BlockSpec(shape, lambda i: (0,) * len(shape))

    in_specs = [batch_spec(d) for d in input_dims]
    in_specs += [resident_spec(op.shape) for op in resident_ops]
    out_spec = pl.BlockSpec((tile_b, P), lambda i: (i, 0))
    out_shape = jax.ShapeDtypeStruct((B, P), out_dtype)

    scratch_shapes = ([pltpu.VMEM((tile_b, sum_d), compute_dtype)]
                      if n_in > 1 else [])

    kernel = _make_kernel(n_in, tuple(input_dims), n_hidden, mu_pad)

    out = pl.pallas_call(
        kernel,
        out_shape=out_shape,
        grid=grid,
        in_specs=in_specs,
        out_specs=out_spec,
        scratch_shapes=scratch_shapes,
        compiler_params=pltpu.CompilerParams(
            dimension_semantics=("parallel",),
            vmem_limit_bytes=vmem_limit),
    )(*inputs, *resident_ops)

    mu = out[:, :latent_dim].astype(result_dtype)
    std = out[:, mu_pad:mu_pad + latent_dim].astype(result_dtype)
    return mu, std


def init_params(key, input_dims, hidden_dims, latent_dim):
    """Deterministic init mimicking nn.Linear default (uniform +/- 1/sqrt(fan_in))."""
    d_in = int(sum(input_dims))
    dims = [d_in] + list(hidden_dims)
    params = {}
    keys = jax.random.split(key, 2 * len(hidden_dims) + 4)
    k = 0
    for i in range(len(hidden_dims)):
        bound = 1.0 / (dims[i] ** 0.5)
        params[f"w{i+1}"] = jax.random.uniform(
            keys[k], (dims[i], dims[i + 1]), jnp.float32, -bound, bound); k += 1
        params[f"b{i+1}"] = jax.random.uniform(
            keys[k], (1, dims[i + 1]), jnp.float32, -bound, bound); k += 1
    bound = 1.0 / (dims[-1] ** 0.5)
    params["wmu"] = jax.random.uniform(
        keys[k], (dims[-1], latent_dim), jnp.float32, -bound, bound); k += 1
    params["bmu"] = jax.random.uniform(
        keys[k], (1, latent_dim), jnp.float32, -bound, bound); k += 1
    params["wsg"] = jax.random.uniform(
        keys[k], (dims[-1], latent_dim), jnp.float32, -bound, bound); k += 1
    params["bsg"] = jax.random.uniform(
        keys[k], (1, latent_dim), jnp.float32, -bound, bound); k += 1
    return params


def reference_forward(inputs, params):
    n_hidden = 0
    while f"w{n_hidden + 1}" in params:
        n_hidden += 1
    h = jnp.concatenate(inputs, axis=1)
    for i in range(1, n_hidden + 1):
        h = jax.nn.softplus(h @ params[f"w{i}"] + params[f"b{i}"])
    mu = h @ params["wmu"] + params["bmu"]
    std = jax.nn.softplus(h @ params["wsg"] + params["bsg"]) + 0.001
    return mu, std


if __name__ == "__main__":
    input_dims = [16, 16]
    hidden_dims = [32, 32]
    latent_dim = 8

    key = jax.random.PRNGKey(0)
    k_p, k_a0, k_a1, k_b0, k_b1 = jax.random.split(key, 5)
    params = init_params(k_p, input_dims, hidden_dims, latent_dim)

    # --- run 1: f32 compute, small ragged batch (tight numeric check) ------
    batch_a = 20                       # tile_b -> 24, one ragged grid step
    xa0 = jax.random.normal(k_a0, (batch_a, input_dims[0]), jnp.float32)
    xa1 = jax.random.normal(k_a1, (batch_a, input_dims[1]), jnp.float32)
    mu_a, std_a = diag_gaussian_sigma_forward(
        [xa0, xa1], params, latent_dim, compute_dtype=jnp.float32)
    mu_a = jax.block_until_ready(mu_a)
    std_a = jax.block_until_ready(std_a)
    mu_ra, std_ra = reference_forward([xa0, xa1], params)
    assert mu_a.shape == (batch_a, latent_dim)
    assert std_a.shape == (batch_a, latent_dim)
    assert jnp.allclose(mu_a, mu_ra, atol=1e-4, rtol=1e-4)
    assert jnp.allclose(std_a, std_ra, atol=1e-4, rtol=1e-4)
    assert bool(jnp.all(std_a > 0.0))

    # --- run 2: default bf16 compute, multi-step grid + ragged last tile ---
    batch_b = 300                      # tile_b -> 256, 2 grid steps
    xb0 = jax.random.normal(k_b0, (batch_b, input_dims[0]), jnp.float32)
    xb1 = jax.random.normal(k_b1, (batch_b, input_dims[1]), jnp.float32)
    mu_b, std_b = diag_gaussian_sigma_forward([xb0, xb1], params, latent_dim)
    mu_b = jax.block_until_ready(mu_b)
    std_b = jax.block_until_ready(std_b)
    mu_rb, std_rb = reference_forward([xb0, xb1], params)
    assert mu_b.shape == (batch_b, latent_dim)
    assert std_b.shape == (batch_b, latent_dim)
    # bf16 MXU operands -> looser tolerance than the f32 run above.
    assert jnp.allclose(mu_b, mu_rb, atol=1e-1, rtol=1e-1)
    assert jnp.allclose(std_b, std_rb, atol=1e-1, rtol=1e-1)
    assert bool(jnp.all(jnp.isfinite(mu_b))) and bool(jnp.all(jnp.isfinite(std_b)))
    assert bool(jnp.all(std_b > 0.0))

    print("KERNEL_OK")
</pallas_src>

<mosaic_0001>
module attributes {stable_mosaic.version = 11 : i64} {
  func.func @kernel(%arg0: i32, %arg1: memref<24x16xf32, #tpu.memory_space<vmem>>, %arg2: memref<24x16xf32, #tpu.memory_space<vmem>>, %arg3: memref<32x32xf32, #tpu.memory_space<vmem>>, %arg4: memref<1x32xf32, #tpu.memory_space<vmem>>, %arg5: memref<32x32xf32, #tpu.memory_space<vmem>>, %arg6: memref<1x32xf32, #tpu.memory_space<vmem>>, %arg7: memref<32x256xf32, #tpu.memory_space<vmem>>, %arg8: memref<1x256xf32, #tpu.memory_space<vmem>>, %arg9: memref<24x256xf32, #tpu.memory_space<vmem>>, %arg10: memref<24x32xf32, #tpu.memory_space<vmem>>) attributes {dimension_semantics = [#tpu.dimension_semantics<parallel>], iteration_bounds = array<i64: 1>, scalar_prefetch = 0 : i64, scratch_operands = 1 : i64, tpu.core_type = #tpu.core_type<tc>, window_params = [{transform_indices = @transform_0, window_bounds = array<i64: 24, 16>}, {transform_indices = @transform_1, window_bounds = array<i64: 24, 16>}, {pipeline_mode = #tpu.pipeline_mode<synchronous>, transform_indices = @transform_2, window_bounds = array<i64: 32, 32>}, {pipeline_mode = #tpu.pipeline_mode<synchronous>, transform_indices = @transform_3, window_bounds = array<i64: 1, 32>}, {pipeline_mode = #tpu.pipeline_mode<synchronous>, transform_indices = @transform_4, window_bounds = array<i64: 32, 32>}, {pipeline_mode = #tpu.pipeline_mode<synchronous>, transform_indices = @transform_5, window_bounds = array<i64: 1, 32>}, {pipeline_mode = #tpu.pipeline_mode<synchronous>, transform_indices = @transform_6, window_bounds = array<i64: 32, 256>}, {pipeline_mode = #tpu.pipeline_mode<synchronous>, transform_indices = @transform_7, window_bounds = array<i64: 1, 256>}, {transform_indices = @transform_8, window_bounds = array<i64: 24, 256>}]} {
    %c0 = arith.constant 0 : index
    %c0_0 = arith.constant 0 : index
    %0 = vector.load %arg1[%c0, %c0_0] : memref<24x16xf32, #tpu.memory_space<vmem>>, vector<24x16xf32>
    %c0_1 = arith.constant 0 : index
    %c0_2 = arith.constant 0 : index
    %1 = vector.load %arg10[%c0_1, %c0_2] : memref<24x32xf32, #tpu.memory_space<vmem>>, vector<24x16xf32>
    tpu.vector_store %arg10[%c0_1, %c0_2], %0 {strides = array<i32>} : memref<24x32xf32, #tpu.memory_space<vmem>>, vector<24x16xf32>,
    %c0_3 = arith.constant 0 : index
    %c0_4 = arith.constant 0 : index
    %2 = vector.load %arg2[%c0_3, %c0_4] : memref<24x16xf32, #tpu.memory_space<vmem>>, vector<24x16xf32>
    %c0_5 = arith.constant 0 : index
    %c16 = arith.constant 16 : index
    %3 = vector.load %arg10[%c0_5, %c16] : memref<24x32xf32, #tpu.memory_space<vmem>>, vector<24x16xf32>
    tpu.vector_store %arg10[%c0_5, %c16], %2 {strides = array<i32>} : memref<24x32xf32, #tpu.memory_space<vmem>>, vector<24x16xf32>,
    %c0_6 = arith.constant 0 : index
    %c0_7 = arith.constant 0 : index
    %4 = vector.load %arg10[%c0_6, %c0_7] : memref<24x32xf32, #tpu.memory_space<vmem>>, vector<24x32xf32>
    %c0_8 = arith.constant 0 : index
    %c0_9 = arith.constant 0 : index
    %5 = vector.load %arg3[%c0_8, %c0_9] : memref<32x32xf32, #tpu.memory_space<vmem>>, vector<32x32xf32>
    %cst = arith.constant dense<0.000000e+00> : vector<24x32xf32>
    %6 = tpu.matmul %4, %5, %cst {dimension_numbers = #tpu.dot_dimension_numbers<[1], [0], [0], [1], [0, 0, 1, 1], [], []>} : vector<24x32xf32>, vector<32x32xf32>, vector<24x32xf32> -> vector<24x32xf32>
    %c0_10 = arith.constant 0 : index
    %c0_11 = arith.constant 0 : index
    %7 = vector.load %arg4[%c0_10, %c0_11] : memref<1x32xf32, #tpu.memory_space<vmem>>, vector<1x32xf32>
    %8 = vector.broadcast %7 : vector<1x32xf32> to vector<24x32xf32>
    %9 = arith.addf %6, %8 : vector<24x32xf32>
    %cst_12 = arith.constant 2.000000e+01 : f32
    %10 = vector.broadcast %cst_12 : f32 to vector<24x32xf32>
    %11 = arith.cmpf ogt, %9, %10 : vector<24x32xf32>
    %12 = math.exp %9 : vector<24x32xf32>
    %13 = math.log1p %12 : vector<24x32xf32>
    %14 = arith.select %11, %9, %13 : vector<24x32xi1>, vector<24x32xf32>
    %c0_13 = arith.constant 0 : index
    %c0_14 = arith.constant 0 : index
    %15 = vector.load %arg5[%c0_13, %c0_14] : memref<32x32xf32, #tpu.memory_space<vmem>>, vector<32x32xf32>
    %cst_15 = arith.constant dense<0.000000e+00> : vector<24x32xf32>
    %16 = tpu.matmul %14, %15, %cst_15 {dimension_numbers = #tpu.dot_dimension_numbers<[1], [0], [0], [1], [0, 0, 1, 1], [], []>} : vector<24x32xf32>, vector<32x32xf32>, vector<24x32xf32> -> vector<24x32xf32>
    %c0_16 = arith.constant 0 : index
    %c0_17 = arith.constant 0 : index
    %17 = vector.load %arg6[%c0_16, %c0_17] : memref<1x32xf32, #tpu.memory_space<vmem>>, vector<1x32xf32>
    %18 = vector.broadcast %17 : vector<1x32xf32> to vector<24x32xf32>
    %19 = arith.addf %16, %18 : vector<24x32xf32>
    %cst_18 = arith.constant 2.000000e+01 : f32
    %20 = vector.broadcast %cst_18 : f32 to vector<24x32xf32>
    %21 = arith.cmpf ogt, %19, %20 : vector<24x32xf32>
    %22 = math.exp %19 : vector<24x32xf32>
    %23 = math.log1p %22 : vector<24x32xf32>
    %24 = arith.select %21, %19, %23 : vector<24x32xi1>, vector<24x32xf32>
    %c0_19 = arith.constant 0 : index
    %c0_20 = arith.constant 0 : index
    %25 = vector.load %arg7[%c0_19, %c0_20] : memref<32x256xf32, #tpu.memory_space<vmem>>, vector<32x256xf32>
    %cst_21 = arith.constant dense<0.000000e+00> : vector<24x256xf32>
    %26 = tpu.matmul %24, %25, %cst_21 {dimension_numbers = #tpu.dot_dimension_numbers<[1], [0], [0], [1], [0, 0, 1, 1], [], []>} : vector<24x32xf32>, vector<32x256xf32>, vector<24x256xf32> -> vector<24x256xf32>
    %c0_22 = arith.constant 0 : index
    %c0_23 = arith.constant 0 : index
    %27 = vector.load %arg8[%c0_22, %c0_23] : memref<1x256xf32, #tpu.memory_space<vmem>>, vector<1x256xf32>
    %28 = vector.broadcast %27 : vector<1x256xf32> to vector<24x256xf32>
    %29 = arith.addf %26, %28 : vector<24x256xf32>
    %30 = vector.extract_strided_slice %29 {offsets = [0, 0], sizes = [24, 128], strides = [1, 1]} : vector<24x256xf32> to vector<24x128xf32>
    %c0_24 = arith.constant 0 : index
    %c0_25 = arith.constant 0 : index
    %31 = vector.load %arg9[%c0_24, %c0_25] : memref<24x256xf32, #tpu.memory_space<vmem>>, vector<24x128xf32>
    tpu.vector_store %arg9[%c0_24, %c0_25], %30 {strides = array<i32>} : memref<24x256xf32, #tpu.memory_space<vmem>>, vector<24x128xf32>,
    %32 = vector.extract_strided_slice %29 {offsets = [0, 128], sizes = [24, 128], strides = [1, 1]} : vector<24x256xf32> to vector<24x128xf32>
    %cst_26 = arith.constant 2.000000e+01 : f32
    %33 = vector.broadcast %cst_26 : f32 to vector<24x128xf32>
    %34 = arith.cmpf ogt, %32, %33 : vector<24x128xf32>
    %35 = math.exp %32 : vector<24x128xf32>
    %36 = math.log1p %35 : vector<24x128xf32>
    %37 = arith.select %34, %32, %36 : vector<24x128xi1>, vector<24x128xf32>
    %cst_27 = arith.constant 1.000000e-03 : f32
    %38 = vector.broadcast %cst_27 : f32 to vector<24x128xf32>
    %39 = arith.addf %37, %38 : vector<24x128xf32>
    %c0_28 = arith.constant 0 : index
    %c128 = arith.constant 128 : index
    %40 = vector.load %arg9[%c0_28, %c128] : memref<24x256xf32, #tpu.memory_space<vmem>>, vector<24x128xf32>
    tpu.vector_store %arg9[%c0_28, %c128], %39 {strides = array<i32>} : memref<24x256xf32, #tpu.memory_space<vmem>>, vector<24x128xf32>,
    return
  }
  func.func @transform_0(%arg0: i32) -> (i32, i32) {
    %c0_i32 = arith.constant 0 : i32
    %c0_i32_0 = arith.constant 0 : i32
    return %arg0, %c0_i32 : i32, i32
  }
  func.func @transform_1(%arg0: i32) -> (i32, i32) {
    %c0_i32 = arith.constant 0 : i32
    %c0_i32_0 = arith.constant 0 : i32
    return %arg0, %c0_i32 : i32, i32
  }
  func.func @transform_2(%arg0: i32) -> (i32, i32) {
    %c0_i32 = arith.constant 0 : i32
    %c0_i32_0 = arith.constant 0 : i32
    %c0_i32_1 = arith.constant 0 : i32
    return %c0_i32, %c0_i32_0 : i32, i32
  }
  func.func @transform_3(%arg0: i32) -> (i32, i32) {
    %c0_i32 = arith.constant 0 : i32
    %c0_i32_0 = arith.constant 0 : i32
    %c0_i32_1 = arith.constant 0 : i32
    return %c0_i32, %c0_i32_0 : i32, i32
  }
  func.func @transform_4(%arg0: i32) -> (i32, i32) {
    %c0_i32 = arith.constant 0 : i32
    %c0_i32_0 = arith.constant 0 : i32
    %c0_i32_1 = arith.constant 0 : i32
    return %c0_i32, %c0_i32_0 : i32, i32
  }
  func.func @transform_5(%arg0: i32) -> (i32, i32) {
    %c0_i32 = arith.constant 0 : i32
    %c0_i32_0 = arith.constant 0 : i32
    %c0_i32_1 = arith.constant 0 : i32
    return %c0_i32, %c0_i32_0 : i32, i32
  }
  func.func @transform_6(%arg0: i32) -> (i32, i32) {
    %c0_i32 = arith.constant 0 : i32
    %c0_i32_0 = arith.constant 0 : i32
    %c0_i32_1 = arith.constant 0 : i32
    return %c0_i32, %c0_i32_0 : i32, i32
  }
  func.func @transform_7(%arg0: i32) -> (i32, i32) {
    %c0_i32 = arith.constant 0 : i32
    %c0_i32_0 = arith.constant 0 : i32
    %c0_i32_1 = arith.constant 0 : i32
    return %c0_i32, %c0_i32_0 : i32, i32
  }
  func.func @transform_8(%arg0: i32) -> (i32, i32) {
    %c0_i32 = arith.constant 0 : i32
    %c0_i32_0 = arith.constant 0 : i32
    return %arg0, %c0_i32 : i32, i32
  }
}

</mosaic_0001>

<bundles_post_ra>
// kernel: tpu_custom_call.1
= control target key start
LH: loop header
LB: loop body
LE: loop exit
PB: predicated region body
PF: predicated region fallthrough
CT: control target
= control target key end

     0   :  { %13 = vsyncpa [#allocation4], 0  ;;  %s874_s0 = inlined_call_operand.vmem [shape: f32[20,16], index: 0, kind: input, shape index: {}]   ;;  %s875_s1 = inlined_call_operand.vmem [shape: f32[20,16], index: 1, kind: input, shape index: {}]   ;;  %s876_s2 = inlined_call_operand.vmem [shape: f32[32,32], index: 2, kind: input, shape index: {}]   ;;  %s877_s3 = inlined_call_operand.vmem [shape: f32[1,32], index: 3, kind: input, shape index: {}]   ;;  %s878_s4 = inlined_call_operand.hbm [shape: f32[32,32], index: 4, kind: input, shape index: {}]   ;;  %s879_s5 = inlined_call_operand.vmem [shape: f32[1,32], index: 5, kind: input, shape index: {}]   ;;  %s880_s6 = inlined_call_operand.vmem [shape: f32[32,256], index: 6, kind: input, shape index: {}]   ;;  %s881_s7 = inlined_call_operand.vmem [shape: f32[1,256], index: 7, kind: input, shape index: {}]   ;;  %s882_s8 = inlined_call_operand.hbm [shape: f32[20,256], index: 8, kind: output, shape index: {}]  }
   0x1   :  { %14 = vsyncpa [#allocation5], 0  ;;  %s705_s27 = smov [#allocation3]   ;;  %s657_s9 = scalar_lea.hbm %s878_s4, 512 }
   0x2   :  { %s28_s28 = sshll.u32 %s705_s27, 4  ;;  %p658_p0 = scmp.ne.s32.totalorder %s878_s4, %s657_s9  ;;  %s29_s28 = int_to_ptr.vmem [resolvable:$true] %s28_s28 }
   0x3   :  { %p661_p1 = scmp.lt.u32.totalorder %s657_s9, %s878_s4 }
   0x5   :  { %p663_p2 = pnand %p661_p1, %p658_p0 }
   0x7   :  { %666 = shalt.err (!%p663_p2)
}
   0x8   :  { %s667_s14 = scalar_lea.vmem %s29_s28, 512  ;;  %p672_p4 = scmp.lt.s32.totalorder %s29_s28, %s29_s28 }
   0x9   :  { %p668_p3 = scmp.ne.s32.totalorder %s29_s28, %s667_s14  ;;  %p673_p5 = scmp.lt.s32.totalorder %s667_s14, %s667_s14 }
   0xb   :  { %p674_p6 = por %p673_p5, %p672_p4 }
   0xd   :  { %p675_p7 = pnand %p674_p6, %p668_p3 }
   0xf   :  { %678 = shalt.err (!%p675_p7)
}
  0x10   :  { %s706_s15 = smov 128   ;;  %s707_s16 = smov 8  }
  0x11   :  { %34 = dma.hbm_to_vmem [thread:$0]  %s878_s4, 512, %s29_s28, [#allocation4], %s706_s15, %s706_s15, %s707_s16  }
  0x12   :  { %701 = dma.done.wait [#allocation4], 512  }
  0x13   :  { %702 = vsyncadd [#allocation4], 4294966784  ;;  %v708_v0 = vmov 0.0|0.0   ;;  %vm709_vm0 = vmmov 0   ;;  %v710_v1 = vmov 0.0   ;;  %vm47_vm1 = vcmask 130048  }
  0x14   :  { %588 = vmatprep.subr.bf16.mxu0 %v708_v0  ;;  %608 = vmatprep.subr.bf16.mxu1 %v708_v0  ;;  %v53_v2 = vld [vmem:[%s875_s1 + $0x10] sm:$0xff]  ;;  %v51_v3 = vld [vmem:[%s875_s1] sm:$0xff]  ;;  %v52_v4 = vld [vmem:[%s875_s1 + $0x8] sm:$0xff]  ;;  %s711_s24 = smov 16   ;;  %vm66_vm2 = vcmask 261248   ;;  %vm84_vm3 = vcmask 261120  }
  0x15   :  { %562 = vmatprep.mubr.msk.f32.mxu0 %vm709_vm0, %v710_v1  ;;  %568 = vmatprep.mubr.msk.f32.mxu1 %vm709_vm0, %v710_v1  ;;  %v46_v5 = vld [vmem:[%s874_s0 + $0x10] sm:$0xff]  ;;  %v44_v6 = vld [vmem:[%s874_s0] sm:$0xff]  ;;  %v74_v8 = vld [vmem:[%s876_s2 + $0x8] sm:$0xff] }
  0x16   :  { %61 = vrot.lane.b32.xlu1 %v53_v2, %s711_s24  ;;  %57 = vrot.lane.b32.xlu0 %v51_v3, %s711_s24  ;;  %50 = vst.msk [vmem:[#allocation2 + $0x10] sm:$0xff] %vm47_vm1, %v46_v5  ;;  %48 = vst.msk [vmem:[#allocation2] sm:$0xff] %vm47_vm1, %v44_v6  ;;  %v73_v7 = vld [vmem:[%s876_s2] sm:$0xff]  ;;  %v45_v9 = vld [vmem:[%s874_s0 + $0x8] sm:$0xff] }
  0x17   :  { %v589_v10 = vpack.c.bf16 %v74_v8, %v73_v7  ;;  %49 = vst.msk [vmem:[#allocation2 + $0x8] sm:$0xff] %vm47_vm1, %v45_v9  ;;  %v75_v11 = vld [vmem:[%s876_s2 + $0x10] sm:$0xff]  ;;  %v76_v12 = vld [vmem:[%s876_s2 + $0x18] sm:$0xff]  ;;  %v214_v21 = vld [vmem:[#allocation3 + $0x8] sm:$0xff] }
  0x18   :  { %v592_v13 = vpack.c.bf16 %v76_v12, %v75_v11  ;;  %v213_v20 = vld [vmem:[#allocation3] sm:$0xff]  ;;  %v215_v23 = vld [vmem:[#allocation3 + $0x10] sm:$0xff]  ;;  %v216_v24 = vld [vmem:[#allocation3 + $0x18] sm:$0xff] }
  0x19   :  { %590 = vmatpush3.bf16.msra.mxu0 %v589_v10  ;;  %610 = vmatpush3.bf16.msra.mxu1 %v589_v10  ;;  %v595_v22 = vpack.c.bf16 %v214_v21, %v213_v20  ;;  %v598_v25 = vpack.c.bf16 %v216_v24, %v215_v23  ;;  %v529_v26 = vld [vmem:[%s877_s3] ss:$0 sm:$0xff]  ;;  %v353_v6 = vld [vmem:[%s880_s6 + $0x8] sm:$0xff]  ;;  %v355_v7 = vld [vmem:[%s880_s6 + $0x18] sm:$0xff] }
  0x1a   :  { %59 = vrot.lane.b32.xlu0 %v52_v4, %s711_s24  ;;  %591 = vmatprep.subr.bf16.mxu0 %v708_v0  ;;  %v600_v8 = vpack.c.bf16 %v355_v7, %v353_v6  ;;  %v352_v9 = vld [vmem:[%s880_s6] sm:$0xff]  ;;  %v354_v10 = vld [vmem:[%s880_s6 + $0x10] sm:$0xff]  ;;  %v357_v12 = vld [vmem:[%s880_s6 + $0x28] sm:$0xff] }
  0x1b   :  { %609 = vmatprep.subr.bf16.mxu1 %v708_v0  ;;  %v602_v11 = vpack.c.bf16 %v354_v10, %v352_v9 }
  0x1d   :  { %593 = vmatpush3.bf16.msra.mxu0 %v592_v13  ;;  %611 = vmatpush3.bf16.msra.mxu1 %v592_v13  ;;  %v359_v13 = vld [vmem:[%s880_s6 + $0x38] sm:$0xff] }
  0x1e   :  { %594 = vmatprep.subr.bf16.mxu1 %v708_v0  ;;  %601 = vmatprep.subr.bf16.mxu0 %v600_v8 }
  0x88   :  { %v62_v14 = vpop.permute.xlu1 %61  ;;  %v58_v15 = vpop.permute.xlu0 %57 }
  0x89   :  { %69 = vst.msk [vmem:[#allocation2 + $0x10] sm:$0xff] %vm66_vm2, %v62_v14  ;;  %67 = vst.msk [vmem:[#allocation2] sm:$0xff] %vm66_vm2, %v58_v15  ;;  %v604_v14 = vpack.c.bf16 %v359_v13, %v357_v12  ;;  %v356_v15 = vld [vmem:[%s880_s6 + $0x20] sm:$0xff] }
  0x8c   :  { %v60_v16 = vpop.permute.xlu0 %59 }
  0x8d   :  { %68 = vst.msk [vmem:[#allocation2 + $0x8] sm:$0xff] %vm66_vm2, %v60_v16  ;;  %v358_v16 = vld [vmem:[%s880_s6 + $0x30] sm:$0xff] }
  0x90   :  { %v70_v17 = vld [vmem:[#allocation2] sm:$0xff]  ;;  %v72_v18 = vld [vmem:[#allocation2 + $0x10] sm:$0xff] }
  0x91   :  { %563 = vmatmul.mubr.msk.f32.vlgmr.msra.gmra.mrb[0].mxu0 %vm84_vm3, %v70_v17  ;;  %569 = vmatmul.mubr.msk.f32.vlgmr.msra.gmra.mrb[0].mxu1 %vm84_vm3, %v72_v18  ;;  %v606_v17 = vpack.c.bf16 %v358_v16, %v356_v15  ;;  %v533_v18 = vld [vmem:[%s879_s5] ss:$0 sm:$0xff] }
  0x92   :  { %565 = vmatprep.mubr.msk.f32.mxu0 %vm709_vm0, %v710_v1  ;;  %579 = vmatprep.mubr.msk.f32.mxu1 %vm709_vm0, %v710_v1 }
  0x93   :  { %596 = vmatpush3.bf16.msra.mxu1 %v595_v22  ;;  %603 = vmatpush1.bf16.msra.mxu0 %v602_v11 }
  0x94   :  { %v71_v19 = vld [vmem:[#allocation2 + $0x8] sm:$0xff]  ;;  %597 = vmatprep.subr.bf16.mxu1 %v708_v0  ;;  %605 = vmatprep.subr.bf16.mxu0 %v604_v14 }
  0x95   :  { %566 = vmatmul.mubr.msk.f32.gmra.mrb[2].mxu0 %vm84_vm3, %v71_v19 }
  0x96   :  { %445 = vmatprep.mubr.f32.mxu0 %v710_v1 }
  0x97   :  { %599 = vmatpush3.bf16.msra.mxu1 %v598_v25  ;;  %607 = vmatpush1.bf16.msra.mxu0 %v606_v17 }
 0x164   :  { %v160_v27 = vpop.f32.mrb[0].mxu0  ;;  %v170_v28 = vpop.f32.mrb[0].mxu1 }
 0x165   :  { %v161_v29 = vadd.f32 %v529_v26, %v160_v27  ;;  %v171_v30 = vadd.f32 %v529_v26, %v170_v28  ;;  %v564_v31 = vpop.f32.mrb[1].mxu0  ;;  %v570_v32 = vpop.f32.mrb[1].mxu1 }
 0x167   :  { %v177_v33 = vmul.f32 1.442695, %v161_v29  ;;  %v181_v34 = vmul.f32 1.442695, %v171_v30  ;;  %vm174_vm5 = vcmp.gt.f32.partialorder %v161_v29, 20.0  ;;  %vm176_vm9 = vcmp.gt.f32.partialorder %v171_v30, 20.0 }
 0x168   :  { %v165_v35 = vpop.f32.mrb[2].mxu0 }
 0x169   :  { %621 = vpow2.f32 %v177_v33  ;;  %v166_v36 = vadd.f32 %v529_v26, %v165_v35  ;;  %v567_v37 = vpop.f32.mrb[3].mxu0 }
 0x16a   :  { %623 = vpow2.f32 %v181_v34 }
 0x16b   :  { %v179_v38 = vmul.f32 1.442695, %v166_v36  ;;  %vm175_vm7 = vcmp.gt.f32.partialorder %v166_v36, 20.0 }
 0x16d   :  { %625 = vpow2.f32 %v179_v38 }
 0x173   :  { %v622_v39 = vpop.eup %621 }
 0x174   :  { %v624_v40 = vpop.eup %623  ;;  %v183_v41 = vadd.f32 1.0, %v622_v39  ;;  %v186_v45 = vmul.f32 -0.5, %v622_v39  ;;  %v189_v48 = vand.u32 2147483647, %v622_v39 }
 0x175   :  { %v201_v42 = vadd.f32 1.0, %v624_v40  ;;  %v204_v49 = vmul.f32 -0.5, %v624_v40  ;;  %v207_v60 = vand.u32 2147483647, %v624_v40 }
 0x176   :  { %627 = vlog2.f32 %v183_v41  ;;  %v187_v46 = vadd.f32 1.0, %v186_v45  ;;  %vm190_vm4 = vcmp.lt.f32.partialorder %v189_v48, 0.0004427343 }
 0x177   :  { %v626_v43 = vpop.eup %625  ;;  %629 = vlog2.f32 %v201_v42  ;;  %v205_v57 = vadd.f32 1.0, %v204_v49  ;;  %vm208_vm8 = vcmp.lt.f32.partialorder %v207_v60, 0.0004427343 }
 0x178   :  { %v192_v44 = vadd.f32 1.0, %v626_v43  ;;  %v195_v47 = vmul.f32 -0.5, %v626_v43  ;;  %v188_v52 = vmul.f32 %v622_v39, %v187_v46  ;;  %v198_v55 = vand.u32 2147483647, %v626_v43 }
 0x179   :  { %v206_v2 = vmul.f32 %v624_v40, %v205_v57 }
 0x17a   :  { %631 = vlog2.f32 %v192_v44  ;;  %v196_v53 = vadd.f32 1.0, %v195_v47  ;;  %vm199_vm6 = vcmp.lt.f32.partialorder %v198_v55, 0.0004427343 }
 0x17c   :  { %v197_v62 = vmul.f32 %v626_v43, %v196_v53 }
 0x180   :  { %v628_v50 = vpop.eup %627 }
 0x181   :  { %v185_v51 = vmul.f32 0.6931472, %v628_v50  ;;  %v630_v54 = vpop.eup %629 }
 0x182   :  { %v203_v63 = vmul.f32 0.6931472, %v630_v54 }
 0x183   :  { %v191_v56 = vsel %vm190_vm4, %v188_v52, %v185_v51 }
 0x184   :  { %v632_v58 = vpop.eup %631  ;;  %v210_v59 = vsel %vm174_vm5, %v161_v29, %v191_v56  ;;  %v209_v4 = vsel %vm208_vm8, %v206_v2, %v203_v63 }
 0x185   :  { %580 = vmatmul.mubr.msk.f32.vlgmr.msra.gmra.mrb[2].mxu1 %vm84_vm3, %v210_v59  ;;  %v194_v61 = vmul.f32 0.6931472, %v632_v58  ;;  %v212_v5 = vsel %vm176_vm9, %v171_v30, %v209_v4 }
 0x186   :  { %582 = vmatprep.mubr.msk.f32.mxu1 %vm709_vm0, %v710_v1 }
 0x187   :  { %v200_v0 = vsel %vm199_vm6, %v197_v62, %v194_v61  ;;  %v362_v61 = vlaneseq }
 0x188   :  { %v211_v3 = vsel %vm175_vm7, %v166_v36, %v200_v0  ;;  %v360_v0 = vld [vmem:[%s881_s7] sm:$0x3]  ;;  %s712_s7 = smov [#allocation6]  }
 0x189   :  { %583 = vmatmul.mubr.msk.f32.gmra.mrb[4].mxu1 %vm84_vm3, %v211_v3  ;;  %v363_v62 = vshrl.u32 %v362_v61, 7  ;;  %s517_s10 = sshll.u32 %s712_s7, 4  ;;  %s518_s10 = int_to_ptr.vmem [resolvable:$true] %s517_s10 }
 0x18a   :  { %585 = vmatprep.mubr.msk.f32.mxu1 %vm709_vm0, %v710_v1  ;;  %s679_s11 = scalar_lea.vmem %s518_s10, 768  ;;  %p684_p9 = scmp.lt.s32.totalorder %s518_s10, %s518_s10 }
 0x18b   :  { %v364_v63 = vsub.s32 0, %v363_v62  ;;  %v368_v2 = vsub.s32 1, %v363_v62  ;;  %p680_p8 = scmp.ne.s32.totalorder %s518_s10, %s679_s11  ;;  %p685_p10 = scmp.lt.s32.totalorder %s679_s11, %s679_s11 }
 0x18d   :  { %586 = vmatmul.mubr.msk.f32.gmra.mrb[6].mxu1 %vm84_vm3, %v212_v5  ;;  %v365_v3 = vrot.slane %v360_v0, %v364_v63  ;;  %v369_v4 = vrot.slane %v360_v0, %v368_v2  ;;  %p686_p11 = por %p685_p10, %p684_p9 }
 0x18f   :  { %p687_p12 = pnand %p686_p11, %p680_p8 }
 0x258   :  { %v299_v19 = vpop.f32.mrb[2].mxu1 }
 0x259   :  { %v300_v20 = vadd.f32 %v533_v18, %v299_v19  ;;  %v581_v21 = vpop.f32.mrb[3].mxu1 }
 0x25b   :  { %v316_v22 = vmul.f32 1.442695, %v300_v20  ;;  %vm313_vm11 = vcmp.gt.f32.partialorder %v300_v20, 20.0 }
 0x25c   :  { %v304_v23 = vpop.f32.mrb[4].mxu1 }
 0x25d   :  { %633 = vpow2.f32 %v316_v22  ;;  %v305_v24 = vadd.f32 %v533_v18, %v304_v23  ;;  %v584_v25 = vpop.f32.mrb[5].mxu1 }
 0x25f   :  { %v318_v26 = vmul.f32 1.442695, %v305_v24  ;;  %vm314_vm13 = vcmp.gt.f32.partialorder %v305_v24, 20.0 }
 0x260   :  { %v309_v27 = vpop.f32.mrb[6].mxu1 }
 0x261   :  { %635 = vpow2.f32 %v318_v26  ;;  %v310_v28 = vadd.f32 %v533_v18, %v309_v27  ;;  %v587_v29 = vpop.f32.mrb[7].mxu1 }
 0x263   :  { %v320_v30 = vmul.f32 1.442695, %v310_v28  ;;  %vm315_vm15 = vcmp.gt.f32.partialorder %v310_v28, 20.0 }
 0x265   :  { %637 = vpow2.f32 %v320_v30 }
 0x267   :  { %v634_v31 = vpop.eup %633 }
 0x268   :  { %v322_v32 = vadd.f32 1.0, %v634_v31  ;;  %v325_v35 = vmul.f32 -0.5, %v634_v31  ;;  %v328_v40 = vand.u32 2147483647, %v634_v31 }
 0x26a   :  { %639 = vlog2.f32 %v322_v32  ;;  %v326_v38 = vadd.f32 1.0, %v325_v35  ;;  %vm329_vm10 = vcmp.lt.f32.partialorder %v328_v40, 0.0004427343 }
 0x26b   :  { %v636_v33 = vpop.eup %635 }
 0x26c   :  { %v331_v34 = vadd.f32 1.0, %v636_v33  ;;  %v334_v39 = vmul.f32 -0.5, %v636_v33  ;;  %v327_v43 = vmul.f32 %v634_v31, %v326_v38  ;;  %v337_v46 = vand.u32 2147483647, %v636_v33 }
 0x26e   :  { %641 = vlog2.f32 %v331_v34  ;;  %v335_v44 = vadd.f32 1.0, %v334_v39  ;;  %vm338_vm12 = vcmp.lt.f32.partialorder %v337_v46, 0.0004427343 }
 0x26f   :  { %v638_v36 = vpop.eup %637 }
 0x270   :  { %v340_v37 = vadd.f32 1.0, %v638_v36  ;;  %v343_v45 = vmul.f32 -0.5, %v638_v36  ;;  %v336_v51 = vmul.f32 %v636_v33, %v335_v44  ;;  %v346_v53 = vand.u32 2147483647, %v638_v36 }
 0x272   :  { %643 = vlog2.f32 %v340_v37  ;;  %v344_v52 = vadd.f32 1.0, %v343_v45  ;;  %vm347_vm14 = vcmp.lt.f32.partialorder %v346_v53, 0.0004427343 }
 0x274   :  { %v640_v41 = vpop.eup %639  ;;  %v345_v58 = vmul.f32 %v638_v36, %v344_v52 }
 0x275   :  { %v324_v42 = vmul.f32 0.6931472, %v640_v41 }
 0x277   :  { %v330_v47 = vsel %vm329_vm10, %v327_v43, %v324_v42 }
 0x278   :  { %v642_v48 = vpop.eup %641  ;;  %v349_v49 = vsel %vm313_vm11, %v300_v20, %v330_v47 }
 0x279   :  { %537 = vmatmul.mubr.msk.f32.vlgmr.msra.gmra.mrb[4].mxu0 %vm84_vm3, %v349_v49  ;;  %v333_v50 = vmul.f32 0.6931472, %v642_v48 }
 0x27a   :  { %451 = vmatprep.mubr.f32.mxu0 %v710_v1 }
 0x27b   :  { %v339_v54 = vsel %vm338_vm12, %v336_v51, %v333_v50 }
 0x27c   :  { %v644_v55 = vpop.eup %643  ;;  %v350_v56 = vsel %vm314_vm13, %v305_v24, %v339_v54 }
 0x27d   :  { %538 = vmatmul.mubr.msk.f32.gmra.mrb[6].mxu0 %vm84_vm3, %v350_v56  ;;  %v342_v57 = vmul.f32 0.6931472, %v644_v55 }
 0x27e   :  { %457 = vmatprep.mubr.f32.mxu0 %v710_v1 }
 0x27f   :  { %v348_v59 = vsel %vm347_vm14, %v345_v58, %v342_v57 }
 0x280   :  { %v351_v60 = vsel %vm315_vm15, %v310_v28, %v348_v59 }
 0x281   :  { %539 = vmatmul.mubr.msk.f32.gmra.mrb[8].mxu0 %vm84_vm3, %v351_v60 }
 0x34c   :  { %v447_v5 = vpop.f32.mrb[4].mxu0 }
 0x34d   :  { %v448_v6 = vadd.f32 %v447_v5, %v365_v3  ;;  %v449_v7 = vpop.f32.mrb[5].mxu0 }
 0x34e   :  { %v450_v1 = vadd.f32 %v449_v7, %v369_v4 }
 0x34f   :  { %464 = vst [vmem:[#allocation6] sm:$0xff] %v448_v6 }
 0x350   :  { %v470_v8 = vmul.f32 1.442695, %v450_v1  ;;  %v453_v9 = vpop.f32.mrb[6].mxu0  ;;  %vm467_vm1 = vcmp.gt.f32.partialorder %v450_v1, 20.0 }
 0x351   :  { %v454_v10 = vadd.f32 %v453_v9, %v365_v3  ;;  %v455_v11 = vpop.f32.mrb[7].mxu0 }
 0x352   :  { %645 = vpow2.f32 %v470_v8  ;;  %v456_v12 = vadd.f32 %v455_v11, %v369_v4 }
 0x353   :  { %465 = vst [vmem:[#allocation6 + $0x10] sm:$0xff] %v454_v10 }
 0x354   :  { %v472_v13 = vmul.f32 1.442695, %v456_v12  ;;  %v459_v14 = vpop.f32.mrb[8].mxu0  ;;  %vm468_vm3 = vcmp.gt.f32.partialorder %v456_v12, 20.0 }
 0x355   :  { %v460_v15 = vadd.f32 %v459_v14, %v365_v3  ;;  %v461_v16 = vpop.f32.mrb[9].mxu0 }
 0x356   :  { %647 = vpow2.f32 %v472_v13  ;;  %v462_v17 = vadd.f32 %v461_v16, %v369_v4 }
 0x357   :  { %466 = vst [vmem:[#allocation6 + $0x20] sm:$0xff] %v460_v15 }
 0x358   :  { %v474_v18 = vmul.f32 1.442695, %v462_v17  ;;  %vm469_vm5 = vcmp.gt.f32.partialorder %v462_v17, 20.0 }
 0x35a   :  { %649 = vpow2.f32 %v474_v18 }
 0x35c   :  { %v646_v19 = vpop.eup %645 }
 0x35d   :  { %v476_v20 = vadd.f32 1.0, %v646_v19  ;;  %v479_v23 = vmul.f32 -0.5, %v646_v19  ;;  %v482_v28 = vand.u32 2147483647, %v646_v19 }
 0x35f   :  { %651 = vlog2.f32 %v476_v20  ;;  %v480_v26 = vadd.f32 1.0, %v479_v23  ;;  %vm483_vm0 = vcmp.lt.f32.partialorder %v482_v28, 0.0004427343 }
 0x360   :  { %v648_v21 = vpop.eup %647 }
 0x361   :  { %v485_v22 = vadd.f32 1.0, %v648_v21  ;;  %v488_v27 = vmul.f32 -0.5, %v648_v21  ;;  %v481_v31 = vmul.f32 %v646_v19, %v480_v26  ;;  %v491_v34 = vand.u32 2147483647, %v648_v21 }
 0x363   :  { %653 = vlog2.f32 %v485_v22  ;;  %v489_v32 = vadd.f32 1.0, %v488_v27  ;;  %vm492_vm2 = vcmp.lt.f32.partialorder %v491_v34, 0.0004427343 }
 0x364   :  { %v650_v24 = vpop.eup %649 }
 0x365   :  { %v494_v25 = vadd.f32 1.0, %v650_v24  ;;  %v497_v33 = vmul.f32 -0.5, %v650_v24  ;;  %v490_v40 = vmul.f32 %v648_v21, %v489_v32  ;;  %v500_v42 = vand.u32 2147483647, %v650_v24 }
 0x367   :  { %655 = vlog2.f32 %v494_v25  ;;  %v498_v41 = vadd.f32 1.0, %v497_v33  ;;  %vm501_vm4 = vcmp.lt.f32.partialorder %v500_v42, 0.0004427343 }
 0x369   :  { %v652_v29 = vpop.eup %651  ;;  %v499_v48 = vmul.f32 %v650_v24, %v498_v41 }
 0x36a   :  { %v478_v30 = vmul.f32 0.6931472, %v652_v29 }
 0x36c   :  { %v484_v35 = vsel %vm483_vm0, %v481_v31, %v478_v30 }
 0x36d   :  { %v654_v36 = vpop.eup %653  ;;  %v503_v37 = vsel %vm467_vm1, %v450_v1, %v484_v35 }
 0x36e   :  { %v506_v38 = vadd.f32 0.001, %v503_v37  ;;  %v487_v39 = vmul.f32 0.6931472, %v654_v36 }
 0x370   :  { %509 = vst [vmem:[#allocation6 + $0x8] sm:$0xff] %v506_v38  ;;  %v493_v43 = vsel %vm492_vm2, %v490_v40, %v487_v39 }
 0x371   :  { %v656_v44 = vpop.eup %655  ;;  %v504_v45 = vsel %vm468_vm3, %v456_v12, %v493_v43 }
 0x372   :  { %v507_v46 = vadd.f32 0.001, %v504_v45  ;;  %v496_v47 = vmul.f32 0.6931472, %v656_v44 }
 0x374   :  { %510 = vst [vmem:[#allocation6 + $0x18] sm:$0xff] %v507_v46  ;;  %v502_v49 = vsel %vm501_vm4, %v499_v48, %v496_v47 }
 0x375   :  { %v505_v50 = vsel %vm469_vm5, %v462_v17, %v502_v49 }
 0x376   :  { %v508_v51 = vadd.f32 0.001, %v505_v50 }
 0x378   :  { %511 = vst [vmem:[#allocation6 + $0x28] sm:$0xff] %v508_v51 }
 0x379   :  { %690 = shalt.err (!%p687_p12)
}
 0x37a   :  { %s691_s14 = scalar_lea.hbm %s882_s8, 768 }
 0x37b   :  { %p692_p13 = scmp.ne.s32.totalorder %s882_s8, %s691_s14  ;;  %p695_p0 = scmp.lt.u32.totalorder %s691_s14, %s882_s8 }
 0x37d   :  { %p697_p1 = pnand %p695_p0, %p692_p13 }
 0x37f   :  { %700 = shalt.err (!%p697_p1)
}
 0x380   :  { %s713_s16 = smov 256  }
 0x381   :  { %523 = dma.vmem_to_hbm [thread:$0]  %s518_s10, 768, %s882_s8, [#allocation5], %s713_s16, %s713_s16, %s711_s24  }
 0x382   :  { %703 = dma.done.wait [#allocation5], 768  }
 0x383   :  { %704 = vsyncadd [#allocation5], 4294966528 }
 0x384   :  { %527 = vsyncpa [#allocation4], 1 }
 0x385   :  { %528 = vsyncpa [#allocation5], 1 }

</bundles_post_ra>
